<compile_context>
chip_gen: v7x
topology: tpu7x:2x2x1
jax: 0.10.0
libtpu: 0.0.40
codegen_flags: <defaults>
</compile_context>

<pallas_src>
import jax
import jax.numpy as jnp
from jax.experimental import pallas as pl
from jax.experimental.pallas import tpu as pltpu

INPUT_DIM = 2
HIDDEN_DIM = 10
OUTPUT_DIM = 1

_LANE = 128          # lane width: batch tile must be a multiple of this
_TB_MAX = 512        # max batch-tile (columns) per grid step; tiny VMEM footprint


def _round_up(n, m):
    return ((n + m - 1) // m) * m


def _sigmoid(x):
    # Single EUP op per element (tanh) instead of exp + reciprocal.
    return 0.5 * (jnp.tanh(0.5 * x) + 1.0)


def mlp_kernel(x_ref, w1_ref, b1_ref, w2_ref, b2_ref, w3_ref, b3_ref, o_ref):
    # x_ref:  (INPUT_DIM, TB)    batch on lanes
    # w1_ref: (HIDDEN_DIM, INPUT_DIM)   b1_ref: (HIDDEN_DIM, 1)
    # w2_ref: (HIDDEN_DIM, HIDDEN_DIM)  b2_ref: (HIDDEN_DIM, 1)
    # w3_ref: (HIDDEN_DIM, OUTPUT_DIM)  b3_ref: (OUTPUT_DIM, 1)
    # o_ref:  (OUTPUT_DIM, TB)
    x = x_ref[...]
    w1 = w1_ref[...]

    # ---- layer 1 + ReLU: K=2 contraction as VPU broadcast-FMAs (no MXU) ----
    h1 = b1_ref[...]                                   # (H, 1) -> broadcasts
    for k in range(INPUT_DIM):                         # static unroll (2 terms)
        h1 = h1 + w1[:, k:k + 1] * x[k:k + 1, :]       # (H,1)*(1,TB) -> (H,TB)
    h1 = jnp.maximum(h1, 0.0)

    # ---- layer 2 + sigmoid: 10x10 contraction on MXU, batch on lanes ----
    h2 = jnp.dot(w2_ref[...], h1, preferred_element_type=jnp.float32)
    h2 = _sigmoid(h2 + b2_ref[...])                    # (H, TB)

    # ---- layer 3 + sigmoid: N=1 -> sublane reduce (XLU/VPU), no MXU ----
    out = jnp.sum(w3_ref[...] * h2, axis=0, keepdims=True) + b3_ref[...]  # (1,TB)
    o_ref[...] = _sigmoid(out).astype(o_ref.dtype)


def neural_network_forward(x, params, *, tb_max=_TB_MAX):
    """x: (B, INPUT_DIM) float32. Returns (B, OUTPUT_DIM) float32.

    Params are stored in PyTorch orientation: w_i is (out, in), b_i is (out, 1).
    """
    w1, b1, w2, b2, w3, b3 = params
    B = x.shape[0]

    # Pick a lane-aligned batch tile and pad the batch up to a multiple of it.
    b_pad = _round_up(max(B, 1), _LANE)
    if b_pad > tb_max:
        tb = tb_max
        b_pad = _round_up(B, tb)
    else:
        tb = b_pad

    # Batch-on-lanes layout: (INPUT_DIM, B_pad); zero-pad extra columns.
    x_t = jnp.pad(x.T.astype(jnp.float32), ((0, 0), (0, b_pad - B)))
    w3_col = w3.T                                      # (HIDDEN_DIM, OUTPUT_DIM)

    grid = (b_pad // tb,)
    out_t = pl.pallas_call(
        mlp_kernel,
        out_shape=jax.ShapeDtypeStruct((OUTPUT_DIM, b_pad), jnp.float32),
        grid=grid,
        in_specs=[
            pl.BlockSpec((INPUT_DIM, tb), lambda i: (0, i)),            # x tile
            pl.BlockSpec((HIDDEN_DIM, INPUT_DIM), lambda i: (0, 0)),    # w1
            pl.BlockSpec((HIDDEN_DIM, 1), lambda i: (0, 0)),            # b1
            pl.BlockSpec((HIDDEN_DIM, HIDDEN_DIM), lambda i: (0, 0)),   # w2
            pl.BlockSpec((HIDDEN_DIM, 1), lambda i: (0, 0)),            # b2
            pl.BlockSpec((HIDDEN_DIM, OUTPUT_DIM), lambda i: (0, 0)),   # w3^T
            pl.BlockSpec((OUTPUT_DIM, 1), lambda i: (0, 0)),            # b3
        ],
        out_specs=pl.BlockSpec((OUTPUT_DIM, tb), lambda i: (0, i)),
        compiler_params=pltpu.CompilerParams(
            dimension_semantics=("parallel",)),
    )(x_t, w1, b1, w2, b2, w3_col, b3)

    # Back to the PyTorch-facing (B, OUTPUT_DIM) layout.
    return out_t[:, :B].T


def init_params(key):
    """PyTorch-style init. Weights (out, in); biases (out, 1)."""
    k1, k2, k3, k4, k5, k6 = jax.random.split(key, 6)

    def uniform(k, shape, fan_in):
        bound = 1.0 / jnp.sqrt(fan_in)
        return jax.random.uniform(k, shape, jnp.float32, -bound, bound)

    w1 = uniform(k1, (HIDDEN_DIM, INPUT_DIM), INPUT_DIM)
    b1 = uniform(k2, (HIDDEN_DIM, 1), INPUT_DIM)
    w2 = uniform(k3, (HIDDEN_DIM, HIDDEN_DIM), HIDDEN_DIM)
    b2 = uniform(k4, (HIDDEN_DIM, 1), HIDDEN_DIM)
    w3 = uniform(k5, (OUTPUT_DIM, HIDDEN_DIM), HIDDEN_DIM)
    b3 = uniform(k6, (OUTPUT_DIM, 1), HIDDEN_DIM)
    return (w1, b1, w2, b2, w3, b3)


def reference_forward(x, params):
    w1, b1, w2, b2, w3, b3 = params
    h1 = jnp.maximum(x @ w1.T + b1.T, 0.0)
    h2 = jax.nn.sigmoid(h1 @ w2.T + b2.T)
    return jax.nn.sigmoid(h2 @ w3.T + b3.T)


if __name__ == "__main__":
    key = jax.random.PRNGKey(0)
    kx, kx2, kp = jax.random.split(key, 3)
    params = init_params(kp)

    # Small batch (pads to one 128-lane tile, grid=(1,)).
    batch = 8
    x = jax.random.normal(kx, (batch, INPUT_DIM), jnp.float32)
    out = jax.block_until_ready(neural_network_forward(x, params))
    ref = reference_forward(x, params)
    assert out.shape == (batch, OUTPUT_DIM)
    assert jnp.allclose(out, ref, atol=1e-5, rtol=1e-5)

    # Larger batch exercising the pipelined grid (pads to 1536 = 3 tiles of 512).
    batch2 = 1200
    x2 = jax.random.normal(kx2, (batch2, INPUT_DIM), jnp.float32)
    out2 = jax.block_until_ready(neural_network_forward(x2, params))
    ref2 = reference_forward(x2, params)
    assert out2.shape == (batch2, OUTPUT_DIM)
    assert jnp.allclose(out2, ref2, atol=1e-5, rtol=1e-5)

    print("KERNEL_OK")
</pallas_src>

<mosaic_0001>
module attributes {stable_mosaic.version = 11 : i64} {
  func.func @mlp_kernel(%arg0: i32, %arg1: memref<2x128xf32, #tpu.memory_space<vmem>>, %arg2: memref<10x2xf32, #tpu.memory_space<vmem>>, %arg3: memref<10x1xf32, #tpu.memory_space<vmem>>, %arg4: memref<10x10xf32, #tpu.memory_space<vmem>>, %arg5: memref<10x1xf32, #tpu.memory_space<vmem>>, %arg6: memref<10x1xf32, #tpu.memory_space<vmem>>, %arg7: memref<1x1xf32, #tpu.memory_space<vmem>>, %arg8: memref<1x128xf32, #tpu.memory_space<vmem>>) attributes {dimension_semantics = [#tpu.dimension_semantics<parallel>], iteration_bounds = array<i64: 1>, scalar_prefetch = 0 : i64, scratch_operands = 0 : i64, tpu.core_type = #tpu.core_type<tc>, window_params = [{transform_indices = @transform_0, window_bounds = array<i64: 2, 128>}, {pipeline_mode = #tpu.pipeline_mode<synchronous>, transform_indices = @transform_1, window_bounds = array<i64: 10, 2>}, {pipeline_mode = #tpu.pipeline_mode<synchronous>, transform_indices = @transform_2, window_bounds = array<i64: 10, 1>}, {pipeline_mode = #tpu.pipeline_mode<synchronous>, transform_indices = @transform_3, window_bounds = array<i64: 10, 10>}, {pipeline_mode = #tpu.pipeline_mode<synchronous>, transform_indices = @transform_4, window_bounds = array<i64: 10, 1>}, {pipeline_mode = #tpu.pipeline_mode<synchronous>, transform_indices = @transform_5, window_bounds = array<i64: 10, 1>}, {pipeline_mode = #tpu.pipeline_mode<synchronous>, transform_indices = @transform_6, window_bounds = array<i64: 1, 1>}, {transform_indices = @transform_7, window_bounds = array<i64: 1, 128>}]} {
    %c0 = arith.constant 0 : index
    %c0_0 = arith.constant 0 : index
    %0 = vector.load %arg1[%c0, %c0_0] : memref<2x128xf32, #tpu.memory_space<vmem>>, vector<2x128xf32>
    %c0_1 = arith.constant 0 : index
    %c0_2 = arith.constant 0 : index
    %1 = vector.load %arg2[%c0_1, %c0_2] : memref<10x2xf32, #tpu.memory_space<vmem>>, vector<10x2xf32>
    %c0_3 = arith.constant 0 : index
    %c0_4 = arith.constant 0 : index
    %2 = vector.load %arg3[%c0_3, %c0_4] : memref<10x1xf32, #tpu.memory_space<vmem>>, vector<10x1xf32>
    %3 = vector.extract_strided_slice %1 {offsets = [0, 0], sizes = [10, 1], strides = [1, 1]} : vector<10x2xf32> to vector<10x1xf32>
    %4 = vector.extract_strided_slice %0 {offsets = [0, 0], sizes = [1, 128], strides = [1, 1]} : vector<2x128xf32> to vector<1x128xf32>
    %5 = vector.broadcast %3 : vector<10x1xf32> to vector<10x128xf32>
    %6 = vector.broadcast %4 : vector<1x128xf32> to vector<10x128xf32>
    %7 = arith.mulf %5, %6 : vector<10x128xf32>
    %8 = vector.broadcast %2 : vector<10x1xf32> to vector<10x128xf32>
    %9 = arith.addf %8, %7 : vector<10x128xf32>
    %10 = vector.extract_strided_slice %1 {offsets = [0, 1], sizes = [10, 1], strides = [1, 1]} : vector<10x2xf32> to vector<10x1xf32>
    %11 = vector.extract_strided_slice %0 {offsets = [1, 0], sizes = [1, 128], strides = [1, 1]} : vector<2x128xf32> to vector<1x128xf32>
    %12 = vector.broadcast %10 : vector<10x1xf32> to vector<10x128xf32>
    %13 = vector.broadcast %11 : vector<1x128xf32> to vector<10x128xf32>
    %14 = arith.mulf %12, %13 : vector<10x128xf32>
    %15 = arith.addf %9, %14 : vector<10x128xf32>
    %cst = arith.constant 0.000000e+00 : f32
    %16 = vector.broadcast %cst : f32 to vector<10x128xf32>
    %17 = arith.maximumf %15, %16 : vector<10x128xf32>
    %c0_5 = arith.constant 0 : index
    %c0_6 = arith.constant 0 : index
    %18 = vector.load %arg4[%c0_5, %c0_6] : memref<10x10xf32, #tpu.memory_space<vmem>>, vector<10x10xf32>
    %cst_7 = arith.constant dense<0.000000e+00> : vector<10x128xf32>
    %19 = tpu.matmul %18, %17, %cst_7 {dimension_numbers = #tpu.dot_dimension_numbers<[1], [0], [0], [1], [0, 0, 1, 1], [], []>} : vector<10x10xf32>, vector<10x128xf32>, vector<10x128xf32> -> vector<10x128xf32>
    %c0_8 = arith.constant 0 : index
    %c0_9 = arith.constant 0 : index
    %20 = vector.load %arg5[%c0_8, %c0_9] : memref<10x1xf32, #tpu.memory_space<vmem>>, vector<10x1xf32>
    %21 = vector.broadcast %20 : vector<10x1xf32> to vector<10x128xf32>
    %22 = arith.addf %19, %21 : vector<10x128xf32>
    %cst_10 = arith.constant 5.000000e-01 : f32
    %23 = vector.broadcast %cst_10 : f32 to vector<10x128xf32>
    %24 = arith.mulf %23, %22 : vector<10x128xf32>
    %25 = math.tanh %24 : vector<10x128xf32>
    %cst_11 = arith.constant 1.000000e+00 : f32
    %26 = vector.broadcast %cst_11 : f32 to vector<10x128xf32>
    %27 = arith.addf %25, %26 : vector<10x128xf32>
    %cst_12 = arith.constant 5.000000e-01 : f32
    %28 = vector.broadcast %cst_12 : f32 to vector<10x128xf32>
    %29 = arith.mulf %28, %27 : vector<10x128xf32>
    %c0_13 = arith.constant 0 : index
    %c0_14 = arith.constant 0 : index
    %30 = vector.load %arg6[%c0_13, %c0_14] : memref<10x1xf32, #tpu.memory_space<vmem>>, vector<10x1xf32>
    %31 = vector.broadcast %30 : vector<10x1xf32> to vector<10x128xf32>
    %32 = arith.mulf %31, %29 : vector<10x128xf32>
    %cst_15 = arith.constant dense<0.000000e+00> : vector<128xf32>
    %33 = vector.multi_reduction <add>, %32, %cst_15 [0] : vector<10x128xf32> to vector<128xf32>
    %34 = vector.shape_cast %33 : vector<128xf32> to vector<1x128xf32>
    %c0_16 = arith.constant 0 : index
    %c0_17 = arith.constant 0 : index
    %35 = vector.load %arg7[%c0_16, %c0_17] : memref<1x1xf32, #tpu.memory_space<vmem>>, vector<1x1xf32>
    %36 = vector.broadcast %35 : vector<1x1xf32> to vector<1x128xf32>
    %37 = arith.addf %34, %36 : vector<1x128xf32>
    %cst_18 = arith.constant 5.000000e-01 : f32
    %38 = vector.broadcast %cst_18 : f32 to vector<1x128xf32>
    %39 = arith.mulf %38, %37 : vector<1x128xf32>
    %40 = math.tanh %39 : vector<1x128xf32>
    %cst_19 = arith.constant 1.000000e+00 : f32
    %41 = vector.broadcast %cst_19 : f32 to vector<1x128xf32>
    %42 = arith.addf %40, %41 : vector<1x128xf32>
    %cst_20 = arith.constant 5.000000e-01 : f32
    %43 = vector.broadcast %cst_20 : f32 to vector<1x128xf32>
    %44 = arith.mulf %43, %42 : vector<1x128xf32>
    %c0_21 = arith.constant 0 : index
    %c0_22 = arith.constant 0 : index
    %45 = vector.load %arg8[%c0_21, %c0_22] : memref<1x128xf32, #tpu.memory_space<vmem>>, vector<1x128xf32>
    tpu.vector_store %arg8[%c0_21, %c0_22], %44 {strides = array<i32>} : memref<1x128xf32, #tpu.memory_space<vmem>>, vector<1x128xf32>,
    return
  }
  func.func @transform_0(%arg0: i32) -> (i32, i32) {
    %c0_i32 = arith.constant 0 : i32
    %c0_i32_0 = arith.constant 0 : i32
    return %c0_i32, %arg0 : i32, i32
  }
  func.func @transform_1(%arg0: i32) -> (i32, i32) {
    %c0_i32 = arith.constant 0 : i32
    %c0_i32_0 = arith.constant 0 : i32
    %c0_i32_1 = arith.constant 0 : i32
    return %c0_i32, %c0_i32_0 : i32, i32
  }
  func.func @transform_2(%arg0: i32) -> (i32, i32) {
    %c0_i32 = arith.constant 0 : i32
    %c0_i32_0 = arith.constant 0 : i32
    %c0_i32_1 = arith.constant 0 : i32
    return %c0_i32, %c0_i32_0 : i32, i32
  }
  func.func @transform_3(%arg0: i32) -> (i32, i32) {
    %c0_i32 = arith.constant 0 : i32
    %c0_i32_0 = arith.constant 0 : i32
    %c0_i32_1 = arith.constant 0 : i32
    return %c0_i32, %c0_i32_0 : i32, i32
  }
  func.func @transform_4(%arg0: i32) -> (i32, i32) {
    %c0_i32 = arith.constant 0 : i32
    %c0_i32_0 = arith.constant 0 : i32
    %c0_i32_1 = arith.constant 0 : i32
    return %c0_i32, %c0_i32_0 : i32, i32
  }
  func.func @transform_5(%arg0: i32) -> (i32, i32) {
    %c0_i32 = arith.constant 0 : i32
    %c0_i32_0 = arith.constant 0 : i32
    %c0_i32_1 = arith.constant 0 : i32
    return %c0_i32, %c0_i32_0 : i32, i32
  }
  func.func @transform_6(%arg0: i32) -> (i32, i32) {
    %c0_i32 = arith.constant 0 : i32
    %c0_i32_0 = arith.constant 0 : i32
    %c0_i32_1 = arith.constant 0 : i32
    return %c0_i32, %c0_i32_0 : i32, i32
  }
  func.func @transform_7(%arg0: i32) -> (i32, i32) {
    %c0_i32 = arith.constant 0 : i32
    %c0_i32_0 = arith.constant 0 : i32
    return %c0_i32, %arg0 : i32, i32
  }
}

</mosaic_0001>

<bundles_post_ra>
// kernel: tpu_custom_call.1
= control target key start
LH: loop header
LB: loop body
LE: loop exit
PB: predicated region body
PF: predicated region fallthrough
CT: control target
= control target key end

     0   :  { %s396_s0 = inlined_call_operand.vmem [shape: f32[2,128], index: 0, kind: input, shape index: {}]   ;;  %s397_s1 = inlined_call_operand.vmem [shape: f32[10,2], index: 1, kind: input, shape index: {}]   ;;  %s398_s2 = inlined_call_operand.vmem [shape: f32[10,1], index: 2, kind: input, shape index: {}]   ;;  %s399_s3 = inlined_call_operand.vmem [shape: f32[10,10], index: 3, kind: input, shape index: {}]   ;;  %s400_s4 = inlined_call_operand.vmem [shape: f32[10,1], index: 4, kind: input, shape index: {}]   ;;  %s401_s5 = inlined_call_operand.vmem [shape: f32[10,1], index: 5, kind: input, shape index: {}]   ;;  %s402_s6 = inlined_call_operand.<no memory space> [shape: f32[1,1], index: 6, kind: input, shape index: {}]   ;;  %s403_s7 = inlined_call_operand.hbm [shape: f32[1,128], index: 7, kind: output, shape index: {}]  }
   0x1   :  { %v12_v0 = vstv %s402_s6 }
   0x2   :  { %13 = vst [vmem:[#allocation2] sm:$0x1] %v12_v0 }
   0x3   :  { %v32_v1 = vld [vmem:[%s398_s2] sm:$0xff]  ;;  %v300_v3 = vmov 0  }
   0x4   :  { %v30_v2 = vld [vmem:[%s397_s1] sm:$0xff]  ;;  %265 = vset.pattern.permute.xlu1 %v300_v3  ;;  %264 = vset.pattern.permute.xlu0 %v300_v3 }
   0x5   :  { %14 = vsyncpa [#allocation4], 0  ;;  %52 = vperm.xlu1 %265, %v32_v1   ;;  %36 = vperm.xlu0 %264, %v30_v2   ;;  %v33_v4 = vld [vmem:[%s398_s2 + $0x8] sm:$0x3]  ;;  %v301_v6 = vmov 1   ;;  %v80_v7 = vld [vmem:[%s399_s3] sm:$0xff]  ;;  %v44_v13 = vlaneseq }
   0x6   :  { %v31_v5 = vld [vmem:[%s397_s1 + $0x8] sm:$0x3]  ;;  %vm94_vm0 = vcmask 80896   ;;  %v82_v9 = vld [vmem:[%s400_s4] sm:$0xff]  ;;  %vm101_vm1 = vcmask 1041408   ;;  %vm302_vm2 = vmmov 1  }
   0x7   :  { %251 = vmatprep.mubr.msk.f32.mxu0 %vm94_vm0, %v80_v7  ;;  %v83_v8 = vld [vmem:[%s400_s4 + $0x8] sm:$0x3]  ;;  %v188_v12 = vld [vmem:[%s401_s5] sm:$0xff]  ;;  %v45_v14 = vshrl.u32 %v44_v13, 7  ;;  %vm255_vm3 = vmpackc.low %vm101_vm1, %vm302_vm2 }
   0x8   :  { %v189_v10 = vld [vmem:[%s401_s5 + $0x8] sm:$0x3]  ;;  %v29_v16 = vld [vmem:[%s396_s0] sm:$0x3] }
   0x9   :  { %57 = vperm.xlu1 %265, %v33_v4   ;;  %41 = vperm.xlu0 %264, %v31_v5   ;;  %v210_v11 = vld [vmem:[#allocation2] sm:$0x1]  ;;  %v46_v15 = vsub.s32 0, %v45_v14  ;;  %v72_v20 = vsub.s32 1, %v45_v14  ;;  %v81_v37 = vld [vmem:[%s399_s3 + $0x8] sm:$0x3] }
   0xa   :  { %s303_s3 = smov [#allocation3]  }
   0xb   :  { %v47_v19 = vrot.slane %v29_v16, %v46_v15  ;;  %v73_v25 = vrot.slane %v29_v16, %v72_v20  ;;  %s232_s5 = sshll.u32 %s303_s3, 4  ;;  %s233_s5 = int_to_ptr.vmem [resolvable:$true] %s232_s5 }
   0xc   :  { %s276_s20 = scalar_lea.vmem %s233_s5, 16  ;;  %s280_s21 = scalar_lea.vmem %s233_s5, 32 }
   0xd   :  { %267 = vset.pattern.permute.xlu1 %v301_v6  ;;  %266 = vset.pattern.permute.xlu0 %v301_v6  ;;  %p277_p0 = scmp.ne.s32.totalorder %s233_s5, %s276_s20  ;;  %p281_p1 = scmp.lt.s32.totalorder %s233_s5, %s233_s5 }
   0xe   :  { %67 = vperm.xlu1 %267, %v31_v5   ;;  %63 = vperm.xlu0 %266, %v30_v2   ;;  %p282_p2 = scmp.lt.s32.totalorder %s280_s21, %s276_s20 }
  0x10   :  { %p283_p3 = por %p282_p2, %p281_p1 }
  0x12   :  { %268 = vset.pattern.permute.xlu1 %v300_v3  ;;  %269 = vset.pattern.permute.xlu0 %v300_v3  ;;  %p284_p4 = pnand %p283_p3, %p277_p0 }
  0x13   :  { %91 = vperm.xlu1 %268, %v83_v8   ;;  %86 = vperm.xlu0 %269, %v82_v9  }
  0x17   :  { %197 = vperm.xlu1 %268, %v189_v10   ;;  %213 = vperm.xlu0 %269, %v210_v11  }
  0x1b   :  { %192 = vperm.xlu1 %268, %v188_v12  }
  0x84   :  { %v53_v17 = vpop.permute.xlu1 %52  ;;  %v37_v18 = vpop.permute.xlu0 %36 }
  0x85   :  { %v48_v23 = vmul.f32 %v47_v19, %v37_v18 }
  0x87   :  { %v60_v28 = vadd.f32 %v53_v17, %v48_v23 }
  0x88   :  { %v58_v21 = vpop.permute.xlu1 %57  ;;  %v42_v22 = vpop.permute.xlu0 %41 }
  0x89   :  { %v49_v24 = vmul.f32 %v47_v19, %v42_v22 }
  0x8b   :  { %v61_v29 = vadd.f32 %v58_v21, %v49_v24 }
  0x8d   :  { %v68_v26 = vpop.permute.xlu1 %67  ;;  %v64_v27 = vpop.permute.xlu0 %63 }
  0x8e   :  { %v75_v30 = vmul.f32 %v73_v25, %v68_v26  ;;  %v74_v31 = vmul.f32 %v73_v25, %v64_v27 }
  0x90   :  { %v77_v32 = vadd.f32 %v75_v30, %v61_v29  ;;  %v76_v33 = vadd.f32 %v74_v31, %v60_v28 }
  0x92   :  { %v79_v34 = vmax.f32 %v77_v32, 0.0  ;;  %v78_v35 = vmax.f32 %v76_v33, 0.0  ;;  %v92_v38 = vpop.permute.xlu1 %91  ;;  %v87_v40 = vpop.permute.xlu0 %86 }
  0x94   :  { %v254_v36 = vpack.c.bf16 %v79_v34, %v78_v35 }
  0x96   :  { %256 = vmatprep.subr.msk.bf16.mxu0 %vm255_vm3, %v254_v36  ;;  %v198_v46 = vpop.permute.xlu1 %197  ;;  %v214_v62 = vpop.permute.xlu0 %213 }
  0x97   :  { %259 = vmatpush3.bf16.msk.msra.mxu0 %vm255_vm3, %v254_v36  ;;  %v219_v0 = vrot.slane %v214_v62, %v46_v15 }
  0x9a   :  { %252 = vmatmul.mubr.msk.f32.vlgmr.msra.gmra.mrb[0].mxu0 %vm94_vm0, %v81_v37  ;;  %v193_v53 = vpop.permute.xlu1 %192 }
 0x16d   :  { %v253_v39 = vpop.f32.mrb[0].mxu0 }
 0x16e   :  { %v177_v41 = vadd.f32 %v253_v39, %v92_v38  ;;  %v171_v42 = vpop.f32.mrb[1].mxu0 }
 0x16f   :  { %v172_v43 = vadd.f32 %v171_v42, %v87_v40 }
 0x170   :  { %v181_v44 = vmul.f32 0.5, %v177_v41 }
 0x171   :  { %v180_v45 = vmul.f32 0.5, %v172_v43 }
 0x172   :  { %270 = vtanh.f32 %v181_v44 }
 0x173   :  { %272 = vtanh.f32 %v180_v45 }
 0x17c   :  { %v271_v47 = vpop.eup %270 }
 0x17d   :  { %v273_v48 = vpop.eup %272  ;;  %v185_v49 = vadd.f32 1.0, %v271_v47 }
 0x17e   :  { %v184_v50 = vadd.f32 1.0, %v273_v48 }
 0x17f   :  { %v187_v51 = vmul.f32 0.5, %v185_v49 }
 0x180   :  { %v186_v52 = vmul.f32 0.5, %v184_v50 }
 0x181   :  { %v201_v54 = vmul.f32 %v198_v46, %v187_v51 }
 0x182   :  { %v200_v55 = vmul.f32 %v193_v53, %v186_v52 }
 0x183   :  { %v202_v56 = vsel %vm101_vm1, %v201_v54, 0.0 }
 0x184   :  { %v203_v57 = vadd.f32 %v202_v56, %v200_v55 }
 0x186   :  { %v204_v58 = vrot.slane %v203_v57, 4 }
 0x188   :  { %v205_v59 = vadd.f32 %v204_v58, %v203_v57 }
 0x18a   :  { %v206_v60 = vrot.slane %v205_v59, 2 }
 0x18c   :  { %v207_v61 = vadd.f32 %v206_v60, %v205_v59 }
 0x18e   :  { %v208_v63 = vrot.slane %v207_v61, 1 }
 0x190   :  { %v209_v1 = vadd.f32 %v208_v63, %v207_v61 }
 0x192   :  { %v220_v2 = vadd.f32 %v219_v0, %v209_v1 }
 0x194   :  { %v221_v3 = vmul.f32 0.5, %v220_v2 }
 0x196   :  { %274 = vtanh.f32 %v221_v3 }
 0x1a0   :  { %v275_v4 = vpop.eup %274 }
 0x1a1   :  { %v223_v5 = vadd.f32 1.0, %v275_v4 }
 0x1a3   :  { %v224_v6 = vmul.f32 0.5, %v223_v5 }
 0x1a5   :  { %225 = vst [vmem:[#allocation3] sm:$0x1] %v224_v6 }
 0x1a6   :  { %287 = shalt.err (!%p284_p4)
}
 0x1a7   :  { %s288_s24 = scalar_lea.hbm %s403_s7, 16 }
 0x1a8   :  { %p289_p5 = scmp.ne.s32.totalorder %s403_s7, %s288_s24  ;;  %p292_p6 = scmp.lt.u32.totalorder %s288_s24, %s403_s7 }
 0x1aa   :  { %p294_p7 = pnand %p292_p6, %p289_p5 }
 0x1ac   :  { %297 = shalt.err (!%p294_p7)
}
 0x1ad   :  { %235 = dma.vmem_to_hbm [thread:$0]  %s233_s5, 16, %s403_s7, [#allocation4]  }
 0x1ae   :  { %298 = dma.done.wait [#allocation4], 16  }
 0x1af   :  { %299 = vsyncadd [#allocation4], 4294967280 }
 0x1b0   :  { %239 = vsyncpa [#allocation4], 1 }

</bundles_post_ra>
